<compile_context>
chip_gen: v7x
topology: tpu7x:2x2x1
jax: 0.10.0
libtpu: 0.0.40
codegen_flags: <defaults>
</compile_context>

<pallas_src>
import jax
import jax.numpy as jnp
from jax.experimental import pallas as pl
from jax.experimental.pallas import tpu as pltpu

_LANE = 128
# Byte budget for one (input block + output block) pair.  The Pallas pipeline
# double-buffers each, so the VMEM footprint is ~2x this value.
_BLOCK_PAIR_BYTES = 4 * 1024 * 1024


def _sublane_multiple(dtype):
    # Second-to-last block dim must be a multiple of 8 * (4 / itemsize) for
    # sub-32-bit dtypes, unless it equals the full array extent.
    itemsize = jnp.dtype(dtype).itemsize
    return 8 * max(1, 4 // itemsize)


def _norm_kernel(scale_ref, shift_ref, img_ref, out_ref):
    # img_ref / out_ref: (1, C, TR, L) blocks.  scale/shift: (C,) f32 in SMEM.
    # Statically unrolled loop over the (small) channel axis; each iteration
    # is a pure VPU multiply-add over a (TR, L) slab with an SMEM scalar splat.
    C = img_ref.shape[1]
    for ci in range(C):
        x = img_ref[0, ci].astype(jnp.float32)
        y = x * scale_ref[ci] + shift_ref[ci]
        out_ref[0, ci] = y.astype(out_ref.dtype)


def norm_layer(img, mu, std):
    """img: (N, C, H, W); mu, std: (C,). Returns (img - mu[c]) / std[c]."""
    N, C, H, W = img.shape
    assert C == mu.shape[0] == std.shape[0]

    # Fold the normalization into one multiply-add: x * (1/std) + (-mu/std).
    scale = (1.0 / std).astype(jnp.float32)
    shift = (-mu / std).astype(jnp.float32)

    # Integer images are promoted to f32; normalized output must be float.
    if not jnp.issubdtype(img.dtype, jnp.floating):
        img = img.astype(jnp.float32)
    in_dtype = img.dtype
    out_dtype = in_dtype  # the dtype cast happens inside the kernel

    in_bytes = jnp.dtype(in_dtype).itemsize
    out_bytes = jnp.dtype(out_dtype).itemsize
    P = H * W

    if P % _LANE == 0:
        # Fast path: lane-dense view of each (H, W) slab. Metadata-only
        # reshape (contiguous last dims), no HBM copy.
        R, L = P // _LANE, _LANE
        x = img.reshape(N, C, R, L)
    else:
        # Ragged path: keep NCHW and tile over H. Stores may be lane-masked
        # (W < 128 or W % 128 != 0) but there is no wrapper-side pad/slice.
        R, L = H, W
        x = img

    # Rows per block: fit the byte budget, respect the sublane-packing
    # multiple (exempt when taking the full row extent), and give >= 2 row
    # tiles when N == 1 so both v7x TensorCores have work.
    mult = _sublane_multiple(in_dtype)
    lanes_padded = -(-L // _LANE) * _LANE
    denom = C * lanes_padded * (in_bytes + out_bytes)
    row_budget = max(_BLOCK_PAIR_BYTES // denom, 1)
    if N == 1 and R > 1:
        row_budget = min(row_budget, -(-R // 2))
    if row_budget >= R:
        TR = R
    else:
        TR = max(mult, (row_budget // mult) * mult)
        if TR >= R:
            TR = R

    grid = (N, pl.cdiv(R, TR))

    out = pl.pallas_call(
        _norm_kernel,
        out_shape=jax.ShapeDtypeStruct((N, C, R, L), out_dtype),
        grid=grid,
        in_specs=[
            pl.BlockSpec(memory_space=pltpu.MemorySpace.SMEM),  # scale (C,)
            pl.BlockSpec(memory_space=pltpu.MemorySpace.SMEM),  # shift (C,)
            pl.BlockSpec((1, C, TR, L), lambda n, r: (n, 0, r, 0)),
        ],
        out_specs=pl.BlockSpec((1, C, TR, L), lambda n, r: (n, 0, r, 0)),
        compiler_params=pltpu.CompilerParams(
            dimension_semantics=("parallel", "parallel")
        ),
    )(scale, shift, x)

    # Metadata-only reshape back to NCHW (identity on the ragged path).
    return out.reshape(N, C, H, W)


if __name__ == "__main__":
    # Same constants as the PyTorch module.
    mu = jnp.array([0.485, 0.456, 0.406], dtype=jnp.float32)
    std = jnp.array([0.229, 0.224, 0.225], dtype=jnp.float32)

    def ref_norm(x):
        return (x.astype(jnp.float32) - mu.reshape(3, 1, 1)) / std.reshape(3, 1, 1)

    # 1) f32, lane-dense fast path (16*16 = 256 divisible by 128).
    img = jax.random.uniform(jax.random.PRNGKey(0), (2, 3, 16, 16), dtype=jnp.float32)
    out = jax.block_until_ready(norm_layer(img, mu, std))
    assert out.shape == img.shape and out.dtype == img.dtype
    assert jnp.allclose(out, ref_norm(img), atol=1e-5, rtol=1e-5)

    # 2) f32, ragged path (17*19 not divisible by 128): no pad/slice copies.
    img2 = jax.random.uniform(jax.random.PRNGKey(1), (1, 3, 17, 19), dtype=jnp.float32)
    out2 = jax.block_until_ready(norm_layer(img2, mu, std))
    assert out2.shape == img2.shape and out2.dtype == img2.dtype
    assert jnp.allclose(out2, ref_norm(img2), atol=1e-5, rtol=1e-5)

    # 3) bf16 input: native-dtype blocks, cast happens inside the kernel.
    img3 = jax.random.uniform(
        jax.random.PRNGKey(2), (2, 3, 64, 64), dtype=jnp.float32
    ).astype(jnp.bfloat16)
    out3 = jax.block_until_ready(norm_layer(img3, mu, std))
    assert out3.shape == img3.shape and out3.dtype == jnp.bfloat16
    assert jnp.allclose(out3.astype(jnp.float32), ref_norm(img3), atol=2e-2, rtol=2e-2)

    print("KERNEL_OK")
</pallas_src>

<mosaic_0001>
module attributes {stable_mosaic.version = 11 : i64} {
  func.func @_norm_kernel(%arg0: i32, %arg1: i32, %arg2: memref<3xf32, #tpu.memory_space<smem>>, %arg3: memref<3xf32, #tpu.memory_space<smem>>, %arg4: memref<1x3x2x128xf32, #tpu.memory_space<vmem>>, %arg5: memref<1x3x2x128xf32, #tpu.memory_space<vmem>>) attributes {dimension_semantics = [#tpu.dimension_semantics<parallel>, #tpu.dimension_semantics<parallel>], iteration_bounds = array<i64: 2, 1>, scalar_prefetch = 0 : i64, scratch_operands = 0 : i64, tpu.core_type = #tpu.core_type<tc>, window_params = [{transform_indices = @transform_0, window_bounds = array<i64: 3>}, {transform_indices = @transform_1, window_bounds = array<i64: 3>}, {transform_indices = @transform_2, window_bounds = array<i64: 1, 3, 2, 128>}, {transform_indices = @transform_3, window_bounds = array<i64: 1, 3, 2, 128>}]} {
    %c0 = arith.constant 0 : index
    %c0_0 = arith.constant 0 : index
    %c0_1 = arith.constant 0 : index
    %c0_2 = arith.constant 0 : index
    %0 = vector.load %arg4[%c0, %c0_0, %c0_1, %c0_2] : memref<1x3x2x128xf32, #tpu.memory_space<vmem>>, vector<1x1x2x128xf32>
    %1 = vector.shape_cast %0 : vector<1x1x2x128xf32> to vector<2x128xf32>
    %c0_3 = arith.constant 0 : index
    %2 = memref.load %arg2[%c0_3] : memref<3xf32, #tpu.memory_space<smem>>
    %3 = vector.broadcast %2 : f32 to vector<2x128xf32>
    %4 = arith.mulf %1, %3 : vector<2x128xf32>
    %c0_4 = arith.constant 0 : index
    %5 = memref.load %arg3[%c0_4] : memref<3xf32, #tpu.memory_space<smem>>
    %6 = vector.broadcast %5 : f32 to vector<2x128xf32>
    %7 = arith.addf %4, %6 : vector<2x128xf32>
    %c0_5 = arith.constant 0 : index
    %c0_6 = arith.constant 0 : index
    %c0_7 = arith.constant 0 : index
    %c0_8 = arith.constant 0 : index
    %8 = vector.load %arg5[%c0_5, %c0_6, %c0_7, %c0_8] : memref<1x3x2x128xf32, #tpu.memory_space<vmem>>, vector<1x1x2x128xf32>
    %9 = vector.shape_cast %8 : vector<1x1x2x128xf32> to vector<2x128xf32>
    %10 = vector.shape_cast %7 : vector<2x128xf32> to vector<1x1x2x128xf32>
    tpu.vector_store %arg5[%c0_5, %c0_6, %c0_7, %c0_8], %10 {strides = array<i32>} : memref<1x3x2x128xf32, #tpu.memory_space<vmem>>, vector<1x1x2x128xf32>,
    %c0_9 = arith.constant 0 : index
    %c1 = arith.constant 1 : index
    %c0_10 = arith.constant 0 : index
    %c0_11 = arith.constant 0 : index
    %11 = vector.load %arg4[%c0_9, %c1, %c0_10, %c0_11] : memref<1x3x2x128xf32, #tpu.memory_space<vmem>>, vector<1x1x2x128xf32>
    %12 = vector.shape_cast %11 : vector<1x1x2x128xf32> to vector<2x128xf32>
    %c1_12 = arith.constant 1 : index
    %13 = memref.load %arg2[%c1_12] : memref<3xf32, #tpu.memory_space<smem>>
    %14 = vector.broadcast %13 : f32 to vector<2x128xf32>
    %15 = arith.mulf %12, %14 : vector<2x128xf32>
    %c1_13 = arith.constant 1 : index
    %16 = memref.load %arg3[%c1_13] : memref<3xf32, #tpu.memory_space<smem>>
    %17 = vector.broadcast %16 : f32 to vector<2x128xf32>
    %18 = arith.addf %15, %17 : vector<2x128xf32>
    %c0_14 = arith.constant 0 : index
    %c1_15 = arith.constant 1 : index
    %c0_16 = arith.constant 0 : index
    %c0_17 = arith.constant 0 : index
    %19 = vector.load %arg5[%c0_14, %c1_15, %c0_16, %c0_17] : memref<1x3x2x128xf32, #tpu.memory_space<vmem>>, vector<1x1x2x128xf32>
    %20 = vector.shape_cast %19 : vector<1x1x2x128xf32> to vector<2x128xf32>
    %21 = vector.shape_cast %18 : vector<2x128xf32> to vector<1x1x2x128xf32>
    tpu.vector_store %arg5[%c0_14, %c1_15, %c0_16, %c0_17], %21 {strides = array<i32>} : memref<1x3x2x128xf32, #tpu.memory_space<vmem>>, vector<1x1x2x128xf32>,
    %c0_18 = arith.constant 0 : index
    %c2 = arith.constant 2 : index
    %c0_19 = arith.constant 0 : index
    %c0_20 = arith.constant 0 : index
    %22 = vector.load %arg4[%c0_18, %c2, %c0_19, %c0_20] : memref<1x3x2x128xf32, #tpu.memory_space<vmem>>, vector<1x1x2x128xf32>
    %23 = vector.shape_cast %22 : vector<1x1x2x128xf32> to vector<2x128xf32>
    %c2_21 = arith.constant 2 : index
    %24 = memref.load %arg2[%c2_21] : memref<3xf32, #tpu.memory_space<smem>>
    %25 = vector.broadcast %24 : f32 to vector<2x128xf32>
    %26 = arith.mulf %23, %25 : vector<2x128xf32>
    %c2_22 = arith.constant 2 : index
    %27 = memref.load %arg3[%c2_22] : memref<3xf32, #tpu.memory_space<smem>>
    %28 = vector.broadcast %27 : f32 to vector<2x128xf32>
    %29 = arith.addf %26, %28 : vector<2x128xf32>
    %c0_23 = arith.constant 0 : index
    %c2_24 = arith.constant 2 : index
    %c0_25 = arith.constant 0 : index
    %c0_26 = arith.constant 0 : index
    %30 = vector.load %arg5[%c0_23, %c2_24, %c0_25, %c0_26] : memref<1x3x2x128xf32, #tpu.memory_space<vmem>>, vector<1x1x2x128xf32>
    %31 = vector.shape_cast %30 : vector<1x1x2x128xf32> to vector<2x128xf32>
    %32 = vector.shape_cast %29 : vector<2x128xf32> to vector<1x1x2x128xf32>
    tpu.vector_store %arg5[%c0_23, %c2_24, %c0_25, %c0_26], %32 {strides = array<i32>} : memref<1x3x2x128xf32, #tpu.memory_space<vmem>>, vector<1x1x2x128xf32>,
    return
  }
  func.func @transform_0(%arg0: i32, %arg1: i32) -> i32 {
    %c0_i32 = arith.constant 0 : i32
    %c0_i32_0 = arith.constant 0 : i32
    return %c0_i32 : i32
  }
  func.func @transform_1(%arg0: i32, %arg1: i32) -> i32 {
    %c0_i32 = arith.constant 0 : i32
    %c0_i32_0 = arith.constant 0 : i32
    return %c0_i32 : i32
  }
  func.func @transform_2(%arg0: i32, %arg1: i32) -> (i32, i32, i32, i32) {
    %c0_i32 = arith.constant 0 : i32
    %c0_i32_0 = arith.constant 0 : i32
    %c0_i32_1 = arith.constant 0 : i32
    return %arg0, %c0_i32, %arg1, %c0_i32_0 : i32, i32, i32, i32
  }
  func.func @transform_3(%arg0: i32, %arg1: i32) -> (i32, i32, i32, i32) {
    %c0_i32 = arith.constant 0 : i32
    %c0_i32_0 = arith.constant 0 : i32
    %c0_i32_1 = arith.constant 0 : i32
    return %arg0, %c0_i32, %arg1, %c0_i32_0 : i32, i32, i32, i32
  }
}

</mosaic_0001>

<bundles_post_ra>
// kernel: tpu_custom_call.1
= control target key start
LH: loop header
LB: loop body
LE: loop exit
PB: predicated region body
PF: predicated region fallthrough
CT: control target
= control target key end

     0   :  { %8 = vsyncpa [#allocation5], 0  ;;  %s895_s0 = inlined_call_operand.hbm [shape: f32[3], index: 0, kind: input, shape index: {}]   ;;  %s896_s1 = inlined_call_operand.vmem [shape: f32[3], index: 1, kind: input, shape index: {}]   ;;  %s897_s2 = inlined_call_operand.hbm [shape: f32[2,3,2,128], index: 2, kind: input, shape index: {}]   ;;  %s898_s3 = inlined_call_operand.hbm [shape: f32[2,3,2,128], index: 3, kind: output, shape index: {}]  }
   0x1   :  { %9 = vsyncpa [#allocation6], 0 }
   0x2   :  { %10 = vsyncpa [#allocation3], 0 }
   0x3   :  { %12 = vsyncpa [#allocation3 + $0x1], 0 }
   0x4   :  { %13 = vsyncpa [#allocation4], 0 }
   0x5   :  { %15 = vsyncpa [#allocation4 + $0x1], 0  ;;  %s673_s12 = smov 0   ;;  %s675_s13 = smov 0  }
   0x6   :  { %s677_s14 = smov 0   ;;  %s679_s15 = smov 0  }
   0x7   :  { %s681_s16 = smov 0   ;;  %s683_s17 = smov 0  }
   0x8 LB: > { %s383_s18 = sadd.s32 4294967295, %s643_s17   ;;  %s384_s19 = sadd.s32 4294967294, %s643_s17   ;;  %s643_s17 = sphi %s683_s17, %s21_s17   ;;  %s639_s16 = sphi %s681_s16, %s919_s16   ;;  %s635_s15 = sphi %s679_s15, %s918_s15   ;;  %s631_s14 = sphi %s677_s14, %s917_s14   ;;  %s627_s13 = sphi %s675_s13, %s916_s13   ;;  %s623_s12 = sphi %s673_s12, %s915_s12  }
   0x9   : > { %s84_s20 = sadd.s32 1, %s631_s14  ;;  %p91_p0 = scmp.ne.s32.totalorder %s631_s14, %s627_s13 }
   0xa   : > { %p92_p1 = scmp.eq.s32.totalorder %s643_s17, 0  ;;  %p97_p2 = scmp.ne.s32.totalorder %s627_s13, %s623_s12 }
   0xb   : > { %p711_p3 = scmp.eq.s32.totalorder %s383_s18, 0  ;;  %p123_p4 = scmp.eq.s32.totalorder %s383_s18, 1 }
   0xc   : > { %p93_p5 = por %p92_p1, %p91_p0  ;;  %p129_p6 = scmp.eq.s32.totalorder %s384_s19, 1 }
   0xd   : > { %s903_s21 = scalar_select %p711_p3, 1, 0 }
   0xe   : > { %p717_p7 = por %p711_p3, %p97_p2  ;;  %p721_p8 = por %p123_p4, %p91_p0 }
   0xf   : > { %p725_p9 = por %p129_p6, %p97_p2  ;;  %p385_p10 = scmp.ge.s32.totalorder %s643_s17, 1 }
  0x10   : > { %s904_s22 = scalar_select %p717_p7, 1, 0 }
  0x11   : > { %s905_s23 = scalar_select %p721_p8, 1, 0 }
  0x12   : > { %s906_s24 = scalar_select %p725_p9, 1, 0 }
  0x13   : > { %p136_p11 = scmp.lt.s32.totalorder %s643_s17, 3  ;;  %p437_p1 = scmp.lt.s32.totalorder %s643_s17, 2 }
  0x14   : > { %s158_s28 = sshll.u32 %s896_s1, 4  ;;  %s169_s4 = sand.u32 1, %s631_s14   ;;  %s159_s28 = int_to_ptr.vmem [resolvable:$true] %s158_s28 }
  0x15   : > { %p732_p13 = pnand %p385_p10, %p136_p11  ;;  %p742_p4 = pnand %p437_p1, %p93_p5 }
  0x16   : > { %s33_s5 = sadd.s32 1, %s639_s16  ;;  %s495_s8 = scalar_lea.hbm %s895_s0, 16 }
  0x17   : > { %p420_p0 = pneg %p732_p13  ;;  %p496_p5 = scmp.ne.s32.totalorder %s895_s0, %s495_s8 }
  0x18   : > { %p502_p1 = scmp.lt.u32.totalorder %s495_s8, %s895_s0 }
  0x19   : > { %p748_p2 = pnand %p420_p0, %p711_p3 }
  0x1b   : > { %p497_p6 = pneg %p748_p2 }
  0x1d   : > { %p498_p10 = pnand %p497_p6, %p496_p5 }
  0x1f   : > { %p499_p11 = pneg %p498_p10 }
  0x21   : > { %p504_p0 = pnand %p502_p1, %p499_p11 }
  0x23   : > { %507 = shalt.err (!%p504_p0)
}
  0x24   : > { %s645_s19 = smov [#allocation2]   ;;  %s508_s6 = scalar_lea.vmem %s159_s28, 16 }
  0x25   : > { %423 = dma.hbm_to_smem (!%p748_p2), %s895_s0, 16, %s645_s19, [#allocation5]  }
  0x26   : > { %p509_p12 = scmp.ne.s32.totalorder %s159_s28, %s508_s6  ;;  %p516_p7 = scmp.lt.s32.totalorder %s159_s28, %s159_s28 }
  0x27   : > { %p517_p5 = scmp.lt.s32.totalorder %s508_s6, %s508_s6 }
  0x28   : > { %p511_p9 = pnand %p509_p12, %p497_p6 }
  0x29   : > { %p518_p10 = por %p517_p5, %p516_p7 }
  0x2a   : > { %p512_p8 = pneg %p511_p9 }
  0x2c   : > { %p519_p3 = pnand %p518_p10, %p512_p8 }
  0x2e   : > { %522 = shalt.err (!%p519_p3)
}
  0x2f   : > { %s646_s7 = smov [#allocation7]   ;;  %p35_p11 = scmp.ge.s32.totalorder %s33_s5, 2 }
  0x30   : > { %426 = dma.vmem_to_smem (!%p748_p2), %s159_s28, 16, %s646_s7, [#allocation6]  }
  0x31   : > { %s404_s8 = smul.u32 6, %s169_s4  ;;  %s921_s5 = smov (%p35_p11, %s33_s5), 0 }
  0x32   : > { %s405_s9 = smul.u32 96, %s639_s16  ;;  %s79_s10 = ssub.s32 %s639_s16, %s921_s5 }
  0x33   : > { %s173_s11 = scalar_lea.vmem [#allocation8], %s404_s8  ;;  %p82_p3 = scmp.eq.s32.totalorder %s79_s10, 0 }
  0x34   : > { %s181_s18 = sshll.u32 %s173_s11, 4  ;;  %s782_s26 = scalar_lea.hbm %s897_s2, %s405_s9  ;;  %s784_s18 = int_to_ptr.vmem [resolvable:$true] %s181_s18 }
  0x35   : > { %s789_s28 = scalar_select %p82_p3, %s631_s14, %s84_s20  }
  0x36   : > { %s793_s27 = scalar_lea.sflag [#allocation3], %s169_s4  ;;  %s523_s6 = scalar_lea.hbm %s782_s26, 96 }
  0x37   : > { %p524_p7 = scmp.ne.s32.totalorder %s782_s26, %s523_s6  ;;  %p525_p8 = pneg %p742_p4 }
  0x38   : > { %s528_s9 = scalar_lea.hbm %s897_s2, 192  ;;  %p529_p2 = scmp.lt.u32.totalorder %s782_s26, %s897_s2 }
  0x39   : > { %p526_p9 = pnand %p525_p8, %p524_p7  ;;  %p530_p6 = scmp.lt.u32.totalorder %s528_s9, %s523_s6 }
  0x3a   : > { %p532_p0 = scmp.lt.u32.totalorder %s523_s6, %s782_s26 }
  0x3b   : > { %p527_p12 = pneg %p526_p9  ;;  %p531_p1 = por %p530_p6, %p529_p2 }
  0x3d   : > { %p533_p5 = por %p532_p0, %p531_p1 }
  0x3f   : > { %p534_p10 = pnand %p533_p5, %p527_p12 }
  0x41   : > { %537 = shalt.err (!%p534_p10)
}
  0x42   : > { %s538_s20 = scalar_lea.vmem %s784_s18, 96  ;;  %s647_s4 = smov [#allocation8]  }
  0x43   : > { %p539_p11 = scmp.ne.s32.totalorder %s784_s18, %s538_s20  ;;  %s543_s30 = sshll.u32 %s647_s4, 4  ;;  %s544_s30 = int_to_ptr.vmem [resolvable:$false] %s543_s30 }
  0x44   : > { %s545_s19 = scalar_lea.vmem %s544_s30, 192  ;;  %p546_p9 = scmp.lt.s32.totalorder %s784_s18, %s544_s30 }
  0x45   : > { %p541_p3 = pnand %p539_p11, %p525_p8  ;;  %p547_p2 = scmp.lt.s32.totalorder %s545_s19, %s538_s20 }
  0x47   : > { %p542_p7 = pneg %p541_p3  ;;  %p548_p6 = por %p547_p2, %p546_p9 }
  0x49   : > { %p549_p1 = pnand %p548_p6, %p542_p7 }
  0x4b   : > { %552 = shalt.err (!%p549_p1)
}
  0x4c   : > { %s648_s6 = smov 32   ;;  %s649_s7 = smov 2  }
  0x4d   : > { %430 = dma.hbm_to_vmem [thread:$0]  (!%p742_p4), %s782_s26, 96, %s784_s18, %s793_s27, %s648_s6, %s648_s6, %s649_s7  }
  0x4e   : > { %193 = sbr.rel (%p732_p13) target bundleno = 125 (0x7d), region = 32  ;;  %p910_p8 = scmp.ne.s32.totalorder (!%p732_p13), %s903_s21, 0 }
  0x55   : > { %606 = dma.done.wait (%p910_p8), [#allocation5], 16  }
  0x56   : > { %608 = vsyncadd (%p910_p8), [#allocation5], 4294967280 }
  0x57   : > { %610 = dma.done.wait (%p910_p8), [#allocation6], 16  }
  0x58   : > { %612 = vsyncadd (%p910_p8), [#allocation6], 4294967280  ;;  %s832_s8 = sand.u32 1, %s627_s13   ;;  %p911_p13 = scmp.ne.s32.totalorder %s904_s22, 0 }
  0x59   : > { %s406_s25 = smul.u32 6, %s832_s8  ;;  %s204_s29 = scalar_lea.sflag [#allocation3], %s832_s8 }
  0x5b   : > { %s207_s18 = scalar_lea.vmem [#allocation8], %s406_s25 }
  0x5c   : > { %614 = dma.done.wait (%p911_p13), %s204_s29, 96  }
  0x5d   : > { %616 = vsyncadd (%p911_p13), %s204_s29, 4294967200 }
  0x5e   : > { %212 = sfence }
  0x5f   : > { %s232_s26 = sld [smem:[#allocation2]]  ;;  %s394_s21 = sld [smem:[#allocation2 + $0x1]]  ;;  %v231_v0 = vld [vmem:[%s207_s18] sm:$0x3]  ;;  %v393_v2 = vld [vmem:[%s207_s18 + $0x2] sm:$0x3] }
  0x60   : > { %s235_s27 = sld [smem:[#allocation7]]  ;;  %s395_s9 = sld [smem:[#allocation7 + $0x1]]  ;;  %v397_v5 = vld [vmem:[%s207_s18 + $0x4] sm:$0x3] }
  0x61   : > { %s398_s10 = sld [smem:[#allocation2 + $0x2]]  ;;  %s230_s20 = scalar_lea.vmem [#allocation9], %s406_s25 }
  0x62   : > { %s399_s11 = sld [smem:[#allocation7 + $0x2]]  ;;  %s274_s4 = sshll.u32 %s230_s20, 4  ;;  %s841_s4 = int_to_ptr.vmem [resolvable:$true] %s274_s4 }
  0x63   : > { %s407_s22 = smul.u32 96, %s635_s15  ;;  %s260_s15 = scalar_lea.sflag [#allocation4], %s832_s8 }
  0x64   : > { %s553_s7 = scalar_lea.vmem %s841_s4, 96  ;;  %p912_p12 = scmp.ne.s32.totalorder %s905_s23, 0 }
  0x65   : > { %v233_v1 = vstv %s232_s26  ;;  %v242_v6 = vstv %s394_s21  ;;  %s846_s6 = scalar_lea.hbm %s898_s3, %s407_s22  ;;  %p554_p4 = scmp.ne.s32.totalorder %s841_s4, %s553_s7 }
  0x66   : > { %v234_v3 = vmul.f32 %v233_v1, %v231_v0  ;;  %v236_v4 = vstv %s235_s27  ;;  %v243_v8 = vmul.f32 %v393_v2, %v242_v6  ;;  %v245_v9 = vstv %s395_s9  ;;  %s650_s25 = smov [#allocation9]  }
  0x67   : > { %v252_v10 = vstv %s398_s10  ;;  %p555_p0 = pnand %p554_p4, %p912_p12  ;;  %s557_s29 = sshll.u32 %s650_s25, 4  ;;  %s558_s29 = int_to_ptr.vmem [resolvable:$false] %s557_s29 }
  0x68   : > { %v237_v7 = vadd.f32 %v236_v4, %v234_v3  ;;  %v253_v11 = vmul.f32 %v397_v5, %v252_v10  ;;  %v255_v12 = vstv %s399_s11  ;;  %v246_v13 = vadd.f32 %v245_v9, %v243_v8  ;;  %s559_s18 = scalar_lea.vmem %s558_s29, 192  ;;  %p560_p10 = scmp.lt.s32.totalorder %s841_s4, %s558_s29 }
  0x69   : > { %p556_p5 = pneg %p555_p0  ;;  %p561_p11 = scmp.lt.s32.totalorder %s559_s18, %s553_s7 }
  0x6a   : > { %238 = vst [vmem:[%s230_s20] sm:$0x3] %v237_v7  ;;  %v256_v14 = vadd.f32 %v255_v12, %v253_v11  ;;  %396 = vst [vmem:[%s230_s20 + $0x2] sm:$0x3] %v246_v13 }
  0x6b   : > { %p562_p3 = por %p561_p11, %p560_p10 }
  0x6c   : > { %400 = vst [vmem:[%s230_s20 + $0x4] sm:$0x3] %v256_v14 }
  0x6d   : > { %p563_p7 = pnand %p562_p3, %p556_p5 }
  0x6f   : > { %566 = shalt.err (!%p563_p7)
}
  0x70   : > { %s567_s26 = scalar_lea.hbm %s846_s6, 96  ;;  %s571_s9 = scalar_lea.hbm %s898_s3, 192 }
  0x71   : > { %p568_p9 = scmp.ne.s32.totalorder %s846_s6, %s567_s26  ;;  %p572_p1 = scmp.lt.u32.totalorder %s846_s6, %s898_s3 }
  0x72   : > { %p573_p8 = scmp.lt.u32.totalorder %s571_s9, %s567_s26  ;;  %p575_p4 = scmp.lt.u32.totalorder %s567_s26, %s846_s6 }
  0x73   : > { %p569_p2 = pnand %p568_p9, %p912_p12 }
  0x74   : > { %p574_p13 = por %p573_p8, %p572_p1 }
  0x75   : > { %p570_p6 = pneg %p569_p2 }
  0x76   : > { %p576_p0 = por %p575_p4, %p574_p13 }
  0x78   : > { %p577_p5 = pnand %p576_p0, %p570_p6 }
  0x7a   : > { %580 = shalt.err (!%p577_p5)
}
  0x7b   : > { %s651_s20 = smov 32   ;;  %s652_s22 = smov 2  }
  0x7c   : > { %418 = dma.vmem_to_hbm [thread:$0]  (%p912_p12), %s841_s4, 96, %s846_s6, %s260_s15, %s651_s20, %s651_s20, %s652_s22  }
  0x7d PF: > { %s289_s30 = sand.u32 1, %s623_s12   ;;  %p913_p10 = scmp.ne.s32.totalorder %s906_s24, 0 }
  0x7e   : > { %p914_p11 = scmp.ge.s32.totalorder %s643_s17, 2  ;;  %s290_s19 = scalar_lea.sflag [#allocation4], %s289_s30 }
  0x80   : > { %p432_p3 = pnand %p914_p11, %p913_p10 }
  0x82   : > { %618 = dma.done.wait (!%p432_p3), %s290_s19, 96  }
  0x83   : > { %620 = vsyncadd (!%p432_p3), %s290_s19, 4294967200  ;;  %s21_s17 = sadd.s32 1, %s643_s17   ;;  %s915_s12 = smov %s627_s13 }
  0x84   : > { %p18_p7 = scmp.ge.s32.totalorder %s21_s17, 4   ;;  %s916_s13 = smov %s631_s14 }
  0x85   : > { %s917_s14 = smov %s789_s28  ;;  %s918_s15 = smov %s639_s16 }
  0x86   : > { %s919_s16 = smov %s921_s5  ;;  %20 = sbr.rel (!%p18_p7) target bundleno = 8 (0x8), region = 91 }
  0x8d   :  { %295 = vsyncpa [#allocation3], 1 }
  0x8e   :  { %297 = vsyncpa [#allocation3 + $0x1], 1 }
  0x8f   :  { %298 = vsyncpa [#allocation4], 1 }
  0x90   :  { %300 = vsyncpa [#allocation4 + $0x1], 1 }
  0x91   :  { %301 = vsyncpa [#allocation5], 1 }
  0x92   :  { %303 = vsyncpa [#allocation5 + $0x1], 1 }
  0x93   :  { %304 = vsyncpa [#allocation6], 1 }
  0x94   :  { %306 = vsyncpa [#allocation6 + $0x1], 1 }

</bundles_post_ra>
